<compile_context>
chip_gen: v7x
topology: tpu7x:2x2x1
jax: 0.10.0
libtpu: 0.0.40
codegen_flags: <defaults>
</compile_context>

<pallas_src>
import functools

import numpy as np
import jax
import jax.numpy as jnp
from jax.experimental import pallas as pl
from jax.experimental.pallas import tpu as pltpu


# ----------------------------- Pallas kernel ------------------------------- #
def _aug_kernel(x_ref, sb_ref, ry_ref, rxT_ref, o_ref):
    # x_ref  : (C, Hin, Win)   raw image planes
    # sb_ref : (2, C, 1, 1)    [0] = 1/std, [1] = -mean/std   (packed: one DMA)
    # ry_ref : (Hout, Hin)     height-resize operator (vflip already folded)
    # rxT_ref: (Win, Wout)     width-resize operator, pre-transposed (hflip folded)
    # o_ref  : (C, Hout, Wout)
    C, Hin, Win = x_ref.shape
    Hout = ry_ref.shape[0]
    Wout = rxT_ref.shape[1]

    # Kornia Normalize: per-channel affine on the input (VPU, (C,1,1) broadcast).
    xn = x_ref[...] * sb_ref[0] + sb_ref[1]                       # (C, Hin, Win)

    # Separable bilinear resize (align_corners=True) as two C-batched MXU matmuls.
    rxb = jnp.broadcast_to(rxT_ref[...], (C, Win, Wout))
    t = jnp.einsum('chw,cwk->chk', xn, rxb,
                   preferred_element_type=jnp.float32)            # (C, Hin, Wout)
    ryb = jnp.broadcast_to(ry_ref[...], (C, Hout, Hin))
    o = jnp.einsum('coh,chk->cok', ryb, t,
                   preferred_element_type=jnp.float32)            # (C, Hout, Wout)
    o_ref[...] = o.astype(o_ref.dtype)


# ----------------------- host-side operator construction ------------------- #
def _resize_matrix(in_size: int, out_size: int) -> np.ndarray:
    """Bilinear interpolation matrix (out_size, in_size), align_corners=True.

    Built with numpy so it is a compile-time constant (no per-call XLA work).
    """
    scale = (in_size - 1) / (out_size - 1) if out_size > 1 else 0.0
    coords = np.arange(out_size, dtype=np.float64) * scale
    i0 = np.clip(np.floor(coords), 0, in_size - 1).astype(np.int64)
    i1 = np.minimum(i0 + 1, in_size - 1)
    w1 = (coords - i0).astype(np.float32)
    w0 = 1.0 - w1
    m = np.zeros((out_size, in_size), dtype=np.float32)
    m[np.arange(out_size), i0] += w0
    m[np.arange(out_size), i1] += w1
    # Guard: bilinear rows must sum to 1 (interpolation is a convex combination).
    assert np.allclose(m.sum(axis=1), 1.0, atol=1e-5)
    return m


# ------------------------------ Wrapper ------------------------------------ #
@functools.partial(jax.jit, static_argnames=("size", "split"))
def cls_data_augmentation(image, mean, std, *, size, split, rng_key):
    """image: (C, Hin, Win) float32 -> (C, size, size) float32."""
    C, Hin, Win = image.shape
    Hout = Wout = int(size)

    # Compile-time constant operators (plus their flipped variants, each ~2 KB).
    ry_np = _resize_matrix(Hin, Hout)                       # (Hout, Hin)
    rx_np = _resize_matrix(Win, Wout)                       # (Wout, Win)
    ry_flip_np = np.ascontiguousarray(ry_np[::-1, :])       # vertical flip
    rxT_np = np.ascontiguousarray(rx_np.T)                  # (Win, Wout)
    rxT_flip_np = np.ascontiguousarray(rx_np[::-1, :].T)    # horizontal flip

    if split == "train":
        k_h, k_v = jax.random.split(rng_key)
        hflip = jax.random.bernoulli(k_h, 0.5)              # flip along W
        vflip = jax.random.bernoulli(k_v, 0.5)              # flip along H
        ry = jnp.where(vflip, ry_flip_np, ry_np)             # tiny 2 KB selects
        rxT = jnp.where(hflip, rxT_flip_np, rxT_np)
    else:
        ry = jnp.asarray(ry_np)
        rxT = jnp.asarray(rxT_np)

    # Packed normalization operand: [0] = 1/std, [1] = -mean/std.
    istd = (1.0 / std).astype(jnp.float32)
    sb = jnp.stack([istd, -mean.astype(jnp.float32) * istd]).reshape(2, C, 1, 1)

    x = image.astype(jnp.float32)

    flops = int(2 * C * Hin * Win                       # normalize
                + 2 * C * Hin * Win * Wout              # width resize
                + 2 * C * Hout * Hin * Wout)            # height resize
    bytes_accessed = int(4 * (C * Hin * Win + 2 * C + Hout * Hin + Win * Wout
                              + C * Hout * Wout))

    out = pl.pallas_call(
        _aug_kernel,
        out_shape=jax.ShapeDtypeStruct((C, Hout, Wout), jnp.float32),
        in_specs=[pl.BlockSpec(memory_space=pltpu.MemorySpace.VMEM)] * 4,
        out_specs=pl.BlockSpec(memory_space=pltpu.MemorySpace.VMEM),
        cost_estimate=pl.CostEstimate(flops=flops, transcendentals=0,
                                      bytes_accessed=bytes_accessed),
    )(x, sb, ry, rxT)
    return out, ry, rxT


def forward(sample, mean, std, *, size, split, rng_key):
    """Mirrors ClsDataAugmentation.forward: returns (x_out, label, meta)."""
    x_out, _, _ = cls_data_augmentation(
        sample["image"], mean, std, size=size, split=split, rng_key=rng_key)
    return x_out, sample["label"], sample["meta"]


# -------------------------------- Main -------------------------------------- #
if __name__ == "__main__":
    key = jax.random.PRNGKey(0)
    k_img, k_lbl, k_aug = jax.random.split(key, 3)

    C, Hin, Win = 12, 16, 16          # BigEarthNet-12 bands, small spatial size
    SIZE = 32                         # Resize target
    image = jax.random.normal(k_img, (C, Hin, Win), dtype=jnp.float32) * 50.0 + 100.0
    label = (jax.random.uniform(k_lbl, (19,)) > 0.5).astype(jnp.int32)  # multilabel
    meta = {"id": 0}
    mean = jnp.linspace(80.0, 120.0, C, dtype=jnp.float32)   # band_stats['mean']
    std = jnp.linspace(20.0, 60.0, C, dtype=jnp.float32)     # band_stats['std']
    sample = {"image": image, "label": label, "meta": meta}

    # ---- train split (random flips folded into the tiny operators) ----
    x_tr, ry, rxT = cls_data_augmentation(image, mean, std,
                                          size=SIZE, split="train", rng_key=k_aug)
    x_tr = jax.block_until_ready(x_tr)
    assert x_tr.shape == (C, SIZE, SIZE), x_tr.shape

    xn = (image - mean[:, None, None]) / std[:, None, None]
    ref = jnp.einsum("oh,chw,wk->cok", ry, xn, rxT)
    err = float(jnp.max(jnp.abs(ref - x_tr)))
    assert err < 1e-4, f"train mismatch vs reference: {err}"

    # ---- module-style forward (same key -> same flips as above) ----
    x_out, y_out, meta_out = forward(sample, mean, std,
                                     size=SIZE, split="train", rng_key=k_aug)
    x_out = jax.block_until_ready(x_out)
    assert x_out.shape == (C, SIZE, SIZE)
    assert y_out.shape == (19,)
    assert float(jnp.max(jnp.abs(x_out - x_tr))) < 1e-6

    # ---- eval split (no flips) ----
    x_ev, ry_e, rxT_e = cls_data_augmentation(image, mean, std,
                                              size=SIZE, split="val", rng_key=k_aug)
    x_ev = jax.block_until_ready(x_ev)
    ref_e = jnp.einsum("oh,chw,wk->cok", ry_e, xn, rxT_e)
    err_e = float(jnp.max(jnp.abs(ref_e - x_ev)))
    assert err_e < 1e-4, f"eval mismatch vs reference: {err_e}"

    print("KERNEL_OK")
</pallas_src>

<mosaic_0001>
module attributes {stable_mosaic.version = 11 : i64} {
  func.func @_aug_kernel(%arg0: memref<12x16x16xf32, #tpu.memory_space<vmem>>, %arg1: memref<2x12x1x1xf32, #tpu.memory_space<vmem>>, %arg2: memref<32x16xf32, #tpu.memory_space<vmem>>, %arg3: memref<16x32xf32, #tpu.memory_space<vmem>>, %arg4: memref<12x32x32xf32, #tpu.memory_space<vmem>>) attributes {dimension_semantics = [], scalar_prefetch = 0 : i64, scratch_operands = 0 : i64, tpu.core_type = #tpu.core_type<tc>} {
    %c0 = arith.constant 0 : index
    %c0_0 = arith.constant 0 : index
    %c0_1 = arith.constant 0 : index
    %0 = vector.load %arg0[%c0, %c0_0, %c0_1] : memref<12x16x16xf32, #tpu.memory_space<vmem>>, vector<12x16x16xf32>
    %c0_2 = arith.constant 0 : index
    %c0_3 = arith.constant 0 : index
    %c0_4 = arith.constant 0 : index
    %c0_5 = arith.constant 0 : index
    %1 = vector.load %arg1[%c0_2, %c0_3, %c0_4, %c0_5] : memref<2x12x1x1xf32, #tpu.memory_space<vmem>>, vector<1x12x1x1xf32>
    %2 = vector.shape_cast %1 : vector<1x12x1x1xf32> to vector<12x1x1xf32>
    %3 = vector.broadcast %2 : vector<12x1x1xf32> to vector<12x16x16xf32>
    %4 = arith.mulf %0, %3 : vector<12x16x16xf32>
    %c1 = arith.constant 1 : index
    %c0_6 = arith.constant 0 : index
    %c0_7 = arith.constant 0 : index
    %c0_8 = arith.constant 0 : index
    %5 = vector.load %arg1[%c1, %c0_6, %c0_7, %c0_8] : memref<2x12x1x1xf32, #tpu.memory_space<vmem>>, vector<1x12x1x1xf32>
    %6 = vector.shape_cast %5 : vector<1x12x1x1xf32> to vector<12x1x1xf32>
    %7 = vector.broadcast %6 : vector<12x1x1xf32> to vector<12x16x16xf32>
    %8 = arith.addf %4, %7 : vector<12x16x16xf32>
    %c0_9 = arith.constant 0 : index
    %c0_10 = arith.constant 0 : index
    %9 = vector.load %arg3[%c0_9, %c0_10] : memref<16x32xf32, #tpu.memory_space<vmem>>, vector<16x32xf32>
    %10 = vector.shape_cast %9 : vector<16x32xf32> to vector<1x16x32xf32>
    %11 = vector.broadcast %10 : vector<1x16x32xf32> to vector<12x16x32xf32>
    "tpu.trace_start"() <{level = 10 : i32, message = "chw,cwk->chk"}> : () -> ()
    %cst = arith.constant dense<0.000000e+00> : vector<12x16x32xf32>
    %12 = tpu.matmul %8, %11, %cst {dimension_numbers = #tpu.dot_dimension_numbers<[2], [1], [1], [2], [0, 0, 0, 1, 1, 2], [0], [0]>} : vector<12x16x16xf32>, vector<12x16x32xf32>, vector<12x16x32xf32> -> vector<12x16x32xf32>
    "tpu.trace_stop"() : () -> ()
    %c0_11 = arith.constant 0 : index
    %c0_12 = arith.constant 0 : index
    %13 = vector.load %arg2[%c0_11, %c0_12] : memref<32x16xf32, #tpu.memory_space<vmem>>, vector<32x16xf32>
    %14 = vector.shape_cast %13 : vector<32x16xf32> to vector<1x32x16xf32>
    %15 = vector.broadcast %14 : vector<1x32x16xf32> to vector<12x32x16xf32>
    "tpu.trace_start"() <{level = 10 : i32, message = "coh,chk->cok"}> : () -> ()
    %cst_13 = arith.constant dense<0.000000e+00> : vector<12x32x32xf32>
    %16 = tpu.matmul %15, %12, %cst_13 {dimension_numbers = #tpu.dot_dimension_numbers<[2], [1], [1], [2], [0, 0, 0, 1, 1, 2], [0], [0]>} : vector<12x32x16xf32>, vector<12x16x32xf32>, vector<12x32x32xf32> -> vector<12x32x32xf32>
    "tpu.trace_stop"() : () -> ()
    %c0_14 = arith.constant 0 : index
    %c0_15 = arith.constant 0 : index
    %c0_16 = arith.constant 0 : index
    %17 = vector.load %arg4[%c0_14, %c0_15, %c0_16] : memref<12x32x32xf32, #tpu.memory_space<vmem>>, vector<12x32x32xf32>
    tpu.vector_store %arg4[%c0_14, %c0_15, %c0_16], %16 {strides = array<i32>} : memref<12x32x32xf32, #tpu.memory_space<vmem>>, vector<12x32x32xf32>,
    return
  }
}

</mosaic_0001>

<bundles_post_ra>
// kernel: cls_data_augmentation.3
= control target key start
LH: loop header
LB: loop body
LE: loop exit
PB: predicated region body
PF: predicated region fallthrough
CT: control target
= control target key end

     0   :  { %v2965_v2 = vmov 0   ;;  %s3370_s0 = inlined_call_operand.vmem [shape: f32[12,16,16], index: 0, kind: input, shape index: {}]   ;;  %s3371_s1 = inlined_call_operand.vmem [shape: f32[2,12,1,1], index: 1, kind: input, shape index: {}]   ;;  %s3372_s2 = inlined_call_operand.vmem [shape: f32[32,16], index: 2, kind: input, shape index: {}]   ;;  %s3373_s3 = inlined_call_operand.vmem [shape: f32[16,32], index: 3, kind: input, shape index: {}]   ;;  %s3374_s4 = inlined_call_operand.hbm [shape: f32[12,32,32], index: 4, kind: output, shape index: {}]  }
   0x1   :  { %v2431_v0 = vld [vmem:[%s3371_s1 + $0xc] ss:$0 sm:$0xff]  ;;  %v2407_v1 = vld [vmem:[%s3371_s1] ss:$0 sm:$0xff]  ;;  %2940 = vset.pattern.permute.xlu1 %v2965_v2  ;;  %2939 = vset.pattern.permute.xlu0 %v2965_v2  ;;  %v2432_v3 = vld [vmem:[%s3371_s1 + $0xd] ss:$0 sm:$0xff] }
   0x2   :  { %260 = vperm.xlu1 %2940, %v2431_v0   ;;  %115 = vperm.xlu0 %2939, %v2407_v1   ;;  %v2408_v4 = vld [vmem:[%s3371_s1 + $0x1] ss:$0 sm:$0xff]  ;;  %v2410_v5 = vld [vmem:[%s3371_s1 + $0x3] ss:$0 sm:$0xff]  ;;  %v2409_v6 = vld [vmem:[%s3371_s1 + $0x2] ss:$0 sm:$0xff] }
   0x3   :  { %v331_v7 = vld [vmem:[%s3373_s3] sm:$0xff]  ;;  %v332_v8 = vld [vmem:[%s3373_s3 + $0x8] sm:$0xff] }
   0x4   :  { %v3018_v9 = vpack.c.bf16 %v332_v8, %v331_v7  ;;  %v2434_v10 = vld [vmem:[%s3371_s1 + $0xf] ss:$0 sm:$0xff]  ;;  %v2433_v11 = vld [vmem:[%s3371_s1 + $0xe] ss:$0 sm:$0xff] }
   0x6   :  { %264 = vperm.xlu1 %2940, %v2432_v3   ;;  %119 = vperm.xlu0 %2939, %v2408_v4  }
   0xa   :  { %127 = vperm.xlu1 %2940, %v2410_v5   ;;  %123 = vperm.xlu0 %2939, %v2409_v6  }
   0xb   :  { %9 = vsyncpa [#allocation3], 0  ;;  %2840 = vmatprep.subr.bf16.mxu0 %v3018_v9  ;;  %2844 = vmatprep.subr.bf16.mxu1 %v3018_v9  ;;  %v2412_v12 = vld [vmem:[%s3371_s1 + $0x5] ss:$0 sm:$0xff]  ;;  %v2411_v13 = vld [vmem:[%s3371_s1 + $0x4] ss:$0 sm:$0xff] }
   0xc   :  { %2842 = vmatpush3.bf16.msra.mxu0 %v3018_v9  ;;  %2846 = vmatpush3.bf16.msra.mxu1 %v3018_v9  ;;  %v2436_v14 = vld [vmem:[%s3371_s1 + $0x11] ss:$0 sm:$0xff]  ;;  %v2435_v15 = vld [vmem:[%s3371_s1 + $0x10] ss:$0 sm:$0xff]  ;;  %v2414_v16 = vld [vmem:[%s3371_s1 + $0x7] ss:$0 sm:$0xff] }
   0xd   :  { %2848 = vmatprep.subr.bf16.mxu0 %v3018_v9  ;;  %2852 = vmatprep.subr.bf16.mxu1 %v3018_v9  ;;  %v2413_v17 = vld [vmem:[%s3371_s1 + $0x6] ss:$0 sm:$0xff]  ;;  %v2438_v18 = vld [vmem:[%s3371_s1 + $0x13] ss:$0 sm:$0xff]  ;;  %v2437_v19 = vld [vmem:[%s3371_s1 + $0x12] ss:$0 sm:$0xff] }
   0xe   :  { %272 = vperm.xlu1 %2940, %v2434_v10   ;;  %268 = vperm.xlu0 %2939, %v2433_v11   ;;  %v2416_v20 = vld [vmem:[%s3371_s1 + $0x9] ss:$0 sm:$0xff]  ;;  %v2415_v21 = vld [vmem:[%s3371_s1 + $0x8] ss:$0 sm:$0xff]  ;;  %v2440_v22 = vld [vmem:[%s3371_s1 + $0x15] ss:$0 sm:$0xff] }
   0xf   :  { %v2439_v23 = vld [vmem:[%s3371_s1 + $0x14] ss:$0 sm:$0xff]  ;;  %v2418_v24 = vld [vmem:[%s3371_s1 + $0xb] ss:$0 sm:$0xff]  ;;  %v2417_v25 = vld [vmem:[%s3371_s1 + $0xa] ss:$0 sm:$0xff] }
  0x10   :  { %v2442_v26 = vld [vmem:[%s3371_s1 + $0x17] ss:$0 sm:$0xff]  ;;  %v2441_v27 = vld [vmem:[%s3371_s1 + $0x16] ss:$0 sm:$0xff]  ;;  %v18_v28 = vld [vmem:[%s3370_s0] sm:$0xff]  ;;  %vm333_vm0 = vcmask 130048  }
  0x11   :  { %v19_v29 = vld [vmem:[%s3370_s0 + $0x8] sm:$0xff]  ;;  %v20_v34 = vld [vmem:[%s3370_s0 + $0x10] sm:$0xff]  ;;  %v21_v35 = vld [vmem:[%s3370_s0 + $0x18] sm:$0xff]  ;;  %vm2342_vm1 = vcmask 261120  }
  0x12   :  { %135 = vperm.xlu1 %2940, %v2412_v12   ;;  %131 = vperm.xlu0 %2939, %v2411_v13   ;;  %v24_v43 = vld [vmem:[%s3370_s0 + $0x30] sm:$0xff]  ;;  %v25_v46 = vld [vmem:[%s3370_s0 + $0x38] sm:$0xff]  ;;  %v22_v48 = vld [vmem:[%s3370_s0 + $0x20] sm:$0xff] }
  0x13   :  { %v23_v49 = vld [vmem:[%s3370_s0 + $0x28] sm:$0xff]  ;;  %v28_v60 = vld [vmem:[%s3370_s0 + $0x50] sm:$0xff]  ;;  %v29_v62 = vld [vmem:[%s3370_s0 + $0x58] sm:$0xff] }
  0x14   :  { %v26_v0 = vld [vmem:[%s3370_s0 + $0x40] sm:$0xff]  ;;  %v27_v1 = vld [vmem:[%s3370_s0 + $0x48] sm:$0xff]  ;;  %v32_v13 = vld [vmem:[%s3370_s0 + $0x70] sm:$0xff] }
  0x16   :  { %280 = vperm.xlu1 %2940, %v2436_v14   ;;  %276 = vperm.xlu0 %2939, %v2435_v15   ;;  %v33_v15 = vld [vmem:[%s3370_s0 + $0x78] sm:$0xff] }
  0x1a   :  { %143 = vperm.xlu1 %2940, %v2414_v16   ;;  %139 = vperm.xlu0 %2939, %v2413_v17   ;;  %v30_v17 = vld [vmem:[%s3370_s0 + $0x60] sm:$0xff] }
  0x1e   :  { %288 = vperm.xlu1 %2940, %v2438_v18   ;;  %284 = vperm.xlu0 %2939, %v2437_v19   ;;  %v31_v18 = vld [vmem:[%s3370_s0 + $0x68] sm:$0xff] }
  0x22   :  { %151 = vperm.xlu1 %2940, %v2416_v20   ;;  %147 = vperm.xlu0 %2939, %v2415_v21  }
  0x26   :  { %296 = vperm.xlu1 %2940, %v2440_v22   ;;  %292 = vperm.xlu0 %2939, %v2439_v23  }
  0x2a   :  { %159 = vperm.xlu1 %2940, %v2418_v24   ;;  %155 = vperm.xlu0 %2939, %v2417_v25  }
  0x2e   :  { %304 = vperm.xlu1 %2940, %v2442_v26   ;;  %300 = vperm.xlu0 %2939, %v2441_v27  }
  0x81   :  { %v261_v30 = vpop.permute.xlu1 %260  ;;  %v116_v31 = vpop.permute.xlu0 %115 }
  0x82   :  { %v162_v32 = vmul.f32 %v116_v31, %v18_v28  ;;  %v163_v33 = vmul.f32 %v116_v31, %v19_v29  ;;  %v36_v29 = vld [vmem:[%s3370_s0 + $0x90] sm:$0xff]  ;;  %v37_v31 = vld [vmem:[%s3370_s0 + $0x98] sm:$0xff] }
  0x84   :  { %v308_v36 = vadd.f32 %v261_v30, %v163_v33  ;;  %v307_v37 = vadd.f32 %v261_v30, %v162_v32  ;;  %v34_v33 = vld [vmem:[%s3370_s0 + $0x80] sm:$0xff] }
  0x85   :  { %v265_v38 = vpop.permute.xlu1 %264  ;;  %v120_v39 = vpop.permute.xlu0 %119 }
  0x86   :  { %v164_v40 = vmul.f32 %v120_v39, %v20_v34  ;;  %v165_v41 = vmul.f32 %v120_v39, %v21_v35  ;;  %2639 = vmatprep.mubr.msk.f32.mxu0 %vm333_vm0, %v307_v37  ;;  %v35_v34 = vld [vmem:[%s3370_s0 + $0x88] sm:$0xff] }
  0x87   :  { %2640 = vmatmul.mubr.msk.f32.vlgmr.msra.gmra.mrb[0].mxu0 %vm333_vm0, %v308_v36 }
  0x88   :  { %v310_v42 = vadd.f32 %v265_v38, %v165_v41  ;;  %v309_v44 = vadd.f32 %v265_v38, %v164_v40  ;;  %2850 = vmatpush3.bf16.msra.mxu0 %v3018_v9 }
  0x89   :  { %v128_v45 = vpop.permute.xlu1 %127  ;;  %v124_v47 = vpop.permute.xlu0 %123  ;;  %2856 = vmatprep.subr.bf16.mxu0 %v3018_v9 }
  0x8a   :  { %2646 = vmatprep.mubr.msk.f32.mxu1 %vm333_vm0, %v309_v44  ;;  %v168_v50 = vmul.f32 %v128_v45, %v24_v43  ;;  %v169_v51 = vmul.f32 %v128_v45, %v25_v46  ;;  %v166_v52 = vmul.f32 %v124_v47, %v22_v48  ;;  %v167_v53 = vmul.f32 %v124_v47, %v23_v49  ;;  %v40_v45 = vld [vmem:[%s3370_s0 + $0xb0] sm:$0xff]  ;;  %v41_v47 = vld [vmem:[%s3370_s0 + $0xb8] sm:$0xff]  ;;  %v38_v49 = vld [vmem:[%s3370_s0 + $0xa0] sm:$0xff] }
  0x8b   :  { %2647 = vmatmul.mubr.msk.f32.vlgmr.msra.gmra.mrb[0].mxu1 %vm333_vm0, %v310_v42 }
  0x8c   :  { %2854 = vmatpush3.bf16.msra.mxu1 %v3018_v9 }
  0x8d   :  { %v273_v54 = vpop.permute.xlu1 %272  ;;  %v269_v55 = vpop.permute.xlu0 %268  ;;  %2860 = vmatprep.subr.bf16.mxu1 %v3018_v9 }
  0x8e   :  { %v313_v56 = vadd.f32 %v273_v54, %v168_v50  ;;  %v314_v57 = vadd.f32 %v273_v54, %v169_v51  ;;  %v311_v58 = vadd.f32 %v269_v55, %v166_v52  ;;  %v312_v59 = vadd.f32 %v269_v55, %v167_v53  ;;  %v39_v50 = vld [vmem:[%s3370_s0 + $0xa8] sm:$0xff] }
  0x90   :  { %2653 = vmatprep.mubr.msk.f32.mxu0 %vm333_vm0, %v311_v58  ;;  %2660 = vmatprep.mubr.msk.f32.mxu1 %vm333_vm0, %v313_v56 }
  0x91   :  { %v136_v61 = vpop.permute.xlu1 %135  ;;  %v132_v63 = vpop.permute.xlu0 %131  ;;  %2654 = vmatmul.mubr.msk.f32.vlgmr.msra.gmra.mrb[2].mxu0 %vm333_vm0, %v312_v59  ;;  %2661 = vmatmul.mubr.msk.f32.vlgmr.msra.gmra.mrb[2].mxu1 %vm333_vm0, %v314_v57 }
  0x92   :  { %2858 = vmatpush3.bf16.msra.mxu0 %v3018_v9  ;;  %2862 = vmatpush3.bf16.msra.mxu1 %v3018_v9  ;;  %v172_v2 = vmul.f32 %v136_v61, %v28_v60  ;;  %v173_v3 = vmul.f32 %v136_v61, %v29_v62  ;;  %v170_v4 = vmul.f32 %v132_v63, %v26_v0 }
  0x93   :  { %2864 = vmatprep.subr.bf16.mxu0 %v3018_v9  ;;  %v171_v5 = vmul.f32 %v132_v63, %v27_v1  ;;  %2868 = vmatprep.subr.bf16.mxu1 %v3018_v9 }
  0x95   :  { %v281_v6 = vpop.permute.xlu1 %280  ;;  %v277_v7 = vpop.permute.xlu0 %276 }
  0x96   :  { %v317_v8 = vadd.f32 %v281_v6, %v172_v2  ;;  %v318_v10 = vadd.f32 %v281_v6, %v173_v3  ;;  %v315_v11 = vadd.f32 %v277_v7, %v170_v4  ;;  %v316_v12 = vadd.f32 %v277_v7, %v171_v5  ;;  %v3206_v2 = vld [vmem:[%s3372_s2 + $0x8] sm:$0xff]  ;;  %v3211_v4 = vld [vmem:[%s3372_s2 + $0x10] sm:$0xff]  ;;  %v3220_v5 = vld [vmem:[%s3372_s2 + $0x18] sm:$0xff] }
  0x98   :  { %2667 = vmatprep.mubr.msk.f32.mxu0 %vm333_vm0, %v315_v11  ;;  %2674 = vmatprep.mubr.msk.f32.mxu1 %vm333_vm0, %v317_v8 }
  0x99   :  { %v144_v14 = vpop.permute.xlu1 %143  ;;  %v140_v16 = vpop.permute.xlu0 %139  ;;  %2668 = vmatmul.mubr.msk.f32.vlgmr.msra.gmra.mrb[4].mxu0 %vm333_vm0, %v316_v12  ;;  %2675 = vmatmul.mubr.msk.f32.vlgmr.msra.gmra.mrb[4].mxu1 %vm333_vm0, %v318_v10 }
  0x9a   :  { %2866 = vmatpush3.bf16.msra.mxu0 %v3018_v9  ;;  %2870 = vmatpush3.bf16.msra.mxu1 %v3018_v9  ;;  %v176_v19 = vmul.f32 %v144_v14, %v32_v13  ;;  %v177_v20 = vmul.f32 %v144_v14, %v33_v15  ;;  %v174_v21 = vmul.f32 %v140_v16, %v30_v17 }
  0x9b   :  { %2872 = vmatprep.subr.bf16.mxu0 %v3018_v9  ;;  %v175_v22 = vmul.f32 %v140_v16, %v31_v18  ;;  %2876 = vmatprep.subr.bf16.mxu1 %v3018_v9 }
  0x9d   :  { %v289_v23 = vpop.permute.xlu1 %288  ;;  %v285_v24 = vpop.permute.xlu0 %284 }
  0x9e   :  { %v321_v25 = vadd.f32 %v289_v23, %v176_v19  ;;  %v322_v26 = vadd.f32 %v289_v23, %v177_v20  ;;  %v319_v27 = vadd.f32 %v285_v24, %v174_v21  ;;  %v320_v28 = vadd.f32 %v285_v24, %v175_v22 }
  0xa0   :  { %2681 = vmatprep.mubr.msk.f32.mxu0 %vm333_vm0, %v319_v27  ;;  %2688 = vmatprep.mubr.msk.f32.mxu1 %vm333_vm0, %v321_v25 }
  0xa1   :  { %v152_v30 = vpop.permute.xlu1 %151  ;;  %v148_v32 = vpop.permute.xlu0 %147  ;;  %2682 = vmatmul.mubr.msk.f32.vlgmr.msra.gmra.mrb[6].mxu0 %vm333_vm0, %v320_v28  ;;  %2689 = vmatmul.mubr.msk.f32.vlgmr.msra.gmra.mrb[6].mxu1 %vm333_vm0, %v322_v26 }
  0xa2   :  { %2874 = vmatpush3.bf16.msra.mxu0 %v3018_v9  ;;  %2878 = vmatpush3.bf16.msra.mxu1 %v3018_v9  ;;  %v180_v35 = vmul.f32 %v152_v30, %v36_v29  ;;  %v181_v36 = vmul.f32 %v152_v30, %v37_v31  ;;  %v178_v37 = vmul.f32 %v148_v32, %v34_v33 }
  0xa3   :  { %2880 = vmatprep.subr.bf16.mxu0 %v3018_v9  ;;  %v179_v38 = vmul.f32 %v148_v32, %v35_v34  ;;  %2884 = vmatprep.subr.bf16.mxu1 %v3018_v9 }
  0xa5   :  { %v297_v39 = vpop.permute.xlu1 %296  ;;  %v293_v40 = vpop.permute.xlu0 %292 }
  0xa6   :  { %v325_v41 = vadd.f32 %v297_v39, %v180_v35  ;;  %v326_v42 = vadd.f32 %v297_v39, %v181_v36  ;;  %v323_v43 = vadd.f32 %v293_v40, %v178_v37  ;;  %v324_v44 = vadd.f32 %v293_v40, %v179_v38 }
  0xa8   :  { %2695 = vmatprep.mubr.msk.f32.mxu0 %vm333_vm0, %v323_v43  ;;  %2702 = vmatprep.mubr.msk.f32.mxu1 %vm333_vm0, %v325_v41 }
  0xa9   :  { %v160_v46 = vpop.permute.xlu1 %159  ;;  %v156_v48 = vpop.permute.xlu0 %155  ;;  %2696 = vmatmul.mubr.msk.f32.vlgmr.msra.gmra.mrb[8].mxu0 %vm333_vm0, %v324_v44  ;;  %2703 = vmatmul.mubr.msk.f32.vlgmr.msra.gmra.mrb[8].mxu1 %vm333_vm0, %v326_v42 }
  0xaa   :  { %2882 = vmatpush3.bf16.msra.mxu0 %v3018_v9  ;;  %2886 = vmatpush3.bf16.msra.mxu1 %v3018_v9  ;;  %v184_v51 = vmul.f32 %v160_v46, %v40_v45  ;;  %v185_v52 = vmul.f32 %v160_v46, %v41_v47  ;;  %v182_v53 = vmul.f32 %v156_v48, %v38_v49  ;;  %v3197_v9 = vld [vmem:[%s3372_s2] sm:$0xff]  ;;  %s2966_s2 = smov [#allocation2]  }
  0xab   :  { %v183_v54 = vmul.f32 %v156_v48, %v39_v50  ;;  %s2396_s12 = sshll.u32 %s2966_s2, 4  ;;  %s2397_s12 = int_to_ptr.vmem [resolvable:$true] %s2396_s12 }
  0xac   :  { %s2941_s13 = scalar_lea.vmem %s2397_s12, 6144  ;;  %p2946_p1 = scmp.lt.s32.totalorder %s2397_s12, %s2397_s12 }
  0xad   :  { %v305_v55 = vpop.permute.xlu1 %304  ;;  %v301_v56 = vpop.permute.xlu0 %300  ;;  %p2942_p0 = scmp.ne.s32.totalorder %s2397_s12, %s2941_s13  ;;  %p2947_p2 = scmp.lt.s32.totalorder %s2941_s13, %s2941_s13 }
  0xae   :  { %v329_v57 = vadd.f32 %v305_v55, %v184_v51  ;;  %v330_v58 = vadd.f32 %v305_v55, %v185_v52  ;;  %v327_v59 = vadd.f32 %v301_v56, %v182_v53  ;;  %v328_v60 = vadd.f32 %v301_v56, %v183_v54 }
  0xaf   :  { %p2948_p3 = por %p2947_p2, %p2946_p1 }
  0xb0   :  { %2709 = vmatprep.mubr.msk.f32.mxu0 %vm333_vm0, %v327_v59  ;;  %2716 = vmatprep.mubr.msk.f32.mxu1 %vm333_vm0, %v329_v57 }
  0xb1   :  { %2710 = vmatmul.mubr.msk.f32.vlgmr.msra.gmra.mrb[10].mxu0 %vm333_vm0, %v328_v60  ;;  %2717 = vmatmul.mubr.msk.f32.vlgmr.msra.gmra.mrb[10].mxu1 %vm333_vm0, %v330_v58  ;;  %p2949_p4 = pnand %p2948_p3, %p2942_p0 }
  0xb2   :  { %2723 = vmatprep.mubr.msk.f32.mxu0 %vm333_vm0, %v3197_v9  ;;  %2733 = vmatprep.mubr.msk.f32.mxu1 %vm333_vm0, %v3197_v9 }
 0x15a   :  { %v2641_v61 = vpop.f32.mrb[0].mxu0 }
 0x15b   :  { %v406_v62 = vpop.f32.mrb[1].mxu0 }
 0x15c   :  { %v2887_v63 = vpack.c.bf16 %v2641_v61, %v406_v62 }
 0x15e   :  { %v2648_v0 = vpop.f32.mrb[0].mxu1  ;;  %2888 = vmatprep.subr.bf16.mxu0 %v2887_v63 }
 0x15f   :  { %v487_v1 = vpop.f32.mrb[1].mxu1  ;;  %2890 = vmatpush3.bf16.msra.mxu0 %v2887_v63 }
 0x160   :  { %v2891_v3 = vpack.c.bf16 %v2648_v0, %v487_v1 }
 0x162   :  { %2892 = vmatprep.subr.bf16.mxu1 %v2891_v3  ;;  %2724 = vmatmul.mubr.msk.f32.vlgmr.msra.gmra.mrb[12].mxu0 %vm333_vm0, %v3206_v2 }
 0x163   :  { %2894 = vmatpush3.bf16.msra.mxu1 %v2891_v3  ;;  %2726 = vmatprep.mubr.msk.f32.mxu0 %vm333_vm0, %v3211_v4 }
 0x164   :  { %v2655_v6 = vpop.f32.mrb[2].mxu0  ;;  %v2662_v7 = vpop.f32.mrb[2].mxu1 }
 0x165   :  { %v568_v8 = vpop.f32.mrb[3].mxu0  ;;  %v649_v10 = vpop.f32.mrb[3].mxu1 }
 0x166   :  { %v2895_v11 = vpack.c.bf16 %v2655_v6, %v568_v8  ;;  %v2899_v12 = vpack.c.bf16 %v2662_v7, %v649_v10  ;;  %2734 = vmatmul.mubr.msk.f32.vlgmr.msra.gmra.mrb[12].mxu1 %vm333_vm0, %v3206_v2  ;;  %2727 = vmatmul.mubr.msk.f32.gmra.mrb[14].mxu0 %vm333_vm0, %v3220_v5 }
 0x167   :  { %2736 = vmatprep.mubr.msk.f32.mxu1 %vm333_vm0, %v3211_v4  ;;  %2743 = vmatprep.mubr.msk.f32.mxu0 %vm333_vm0, %v3197_v9 }
 0x168   :  { %2896 = vmatprep.subr.bf16.mxu0 %v2895_v11  ;;  %2900 = vmatprep.subr.bf16.mxu1 %v2899_v12 }
 0x169   :  { %2898 = vmatpush3.bf16.msra.mxu0 %v2895_v11  ;;  %2902 = vmatpush3.bf16.msra.mxu1 %v2899_v12 }
 0x16a   :  { %2737 = vmatmul.mubr.msk.f32.gmra.mrb[14].mxu1 %vm333_vm0, %v3220_v5 }
 0x16b   :  { %2753 = vmatprep.mubr.msk.f32.mxu1 %vm333_vm0, %v3197_v9 }
 0x16c   :  { %v2669_v13 = vpop.f32.mrb[4].mxu0  ;;  %v2676_v14 = vpop.f32.mrb[4].mxu1  ;;  %2744 = vmatmul.mubr.msk.f32.vlgmr.msra.gmra.mrb[16].mxu0 %vm333_vm0, %v3206_v2 }
 0x16d   :  { %v730_v15 = vpop.f32.mrb[5].mxu0  ;;  %v811_v16 = vpop.f32.mrb[5].mxu1  ;;  %2746 = vmatprep.mubr.msk.f32.mxu0 %vm333_vm0, %v3211_v4 }
 0x16e   :  { %v2903_v17 = vpack.c.bf16 %v2669_v13, %v730_v15  ;;  %v2907_v18 = vpack.c.bf16 %v2676_v14, %v811_v16  ;;  %2754 = vmatmul.mubr.msk.f32.vlgmr.msra.gmra.mrb[16].mxu1 %vm333_vm0, %v3206_v2 }
 0x16f   :  { %2756 = vmatprep.mubr.msk.f32.mxu1 %vm333_vm0, %v3211_v4 }
 0x170   :  { %2904 = vmatprep.subr.bf16.mxu0 %v2903_v17  ;;  %2908 = vmatprep.subr.bf16.mxu1 %v2907_v18 }
 0x171   :  { %2906 = vmatpush3.bf16.msra.mxu0 %v2903_v17  ;;  %2910 = vmatpush3.bf16.msra.mxu1 %v2907_v18 }
 0x172   :  { %2747 = vmatmul.mubr.msk.f32.gmra.mrb[18].mxu0 %vm333_vm0, %v3220_v5  ;;  %2757 = vmatmul.mubr.msk.f32.gmra.mrb[18].mxu1 %vm333_vm0, %v3220_v5 }
 0x173   :  { %2763 = vmatprep.mubr.msk.f32.mxu0 %vm333_vm0, %v3197_v9  ;;  %2773 = vmatprep.mubr.msk.f32.mxu1 %vm333_vm0, %v3197_v9 }
 0x174   :  { %v2683_v19 = vpop.f32.mrb[6].mxu0  ;;  %v2690_v20 = vpop.f32.mrb[6].mxu1 }
 0x175   :  { %v892_v21 = vpop.f32.mrb[7].mxu0  ;;  %v973_v22 = vpop.f32.mrb[7].mxu1 }
 0x176   :  { %v2911_v23 = vpack.c.bf16 %v2683_v19, %v892_v21  ;;  %v2915_v24 = vpack.c.bf16 %v2690_v20, %v973_v22  ;;  %2764 = vmatmul.mubr.msk.f32.vlgmr.msra.gmra.mrb[20].mxu0 %vm333_vm0, %v3206_v2  ;;  %2774 = vmatmul.mubr.msk.f32.vlgmr.msra.gmra.mrb[20].mxu1 %vm333_vm0, %v3206_v2 }
 0x177   :  { %2766 = vmatprep.mubr.msk.f32.mxu0 %vm333_vm0, %v3211_v4  ;;  %2776 = vmatprep.mubr.msk.f32.mxu1 %vm333_vm0, %v3211_v4 }
 0x178   :  { %2912 = vmatprep.subr.bf16.mxu0 %v2911_v23  ;;  %2916 = vmatprep.subr.bf16.mxu1 %v2915_v24 }
 0x179   :  { %2914 = vmatpush3.bf16.msra.mxu0 %v2911_v23  ;;  %2918 = vmatpush3.bf16.msra.mxu1 %v2915_v24 }
 0x17a   :  { %2767 = vmatmul.mubr.msk.f32.gmra.mrb[22].mxu0 %vm333_vm0, %v3220_v5  ;;  %2777 = vmatmul.mubr.msk.f32.gmra.mrb[22].mxu1 %vm333_vm0, %v3220_v5 }
 0x17b   :  { %2783 = vmatprep.mubr.msk.f32.mxu0 %vm333_vm0, %v3197_v9  ;;  %2793 = vmatprep.mubr.msk.f32.mxu1 %vm333_vm0, %v3197_v9 }
 0x17c   :  { %v2697_v25 = vpop.f32.mrb[8].mxu0  ;;  %v2704_v26 = vpop.f32.mrb[8].mxu1 }
 0x17d   :  { %v1054_v27 = vpop.f32.mrb[9].mxu0  ;;  %v1135_v28 = vpop.f32.mrb[9].mxu1 }
 0x17e   :  { %v2919_v29 = vpack.c.bf16 %v2697_v25, %v1054_v27  ;;  %v2923_v30 = vpack.c.bf16 %v2704_v26, %v1135_v28  ;;  %2784 = vmatmul.mubr.msk.f32.vlgmr.msra.gmra.mrb[24].mxu0 %vm333_vm0, %v3206_v2  ;;  %2794 = vmatmul.mubr.msk.f32.vlgmr.msra.gmra.mrb[24].mxu1 %vm333_vm0, %v3206_v2 }
 0x17f   :  { %2786 = vmatprep.mubr.msk.f32.mxu0 %vm333_vm0, %v3211_v4  ;;  %2796 = vmatprep.mubr.msk.f32.mxu1 %vm333_vm0, %v3211_v4 }
 0x180   :  { %2920 = vmatprep.subr.bf16.mxu0 %v2919_v29  ;;  %2924 = vmatprep.subr.bf16.mxu1 %v2923_v30 }
 0x181   :  { %2922 = vmatpush3.bf16.msra.mxu0 %v2919_v29  ;;  %2926 = vmatpush3.bf16.msra.mxu1 %v2923_v30 }
 0x182   :  { %2787 = vmatmul.mubr.msk.f32.gmra.mrb[26].mxu0 %vm333_vm0, %v3220_v5  ;;  %2797 = vmatmul.mubr.msk.f32.gmra.mrb[26].mxu1 %vm333_vm0, %v3220_v5 }
 0x183   :  { %2803 = vmatprep.mubr.msk.f32.mxu0 %vm333_vm0, %v3197_v9  ;;  %2813 = vmatprep.mubr.msk.f32.mxu1 %vm333_vm0, %v3197_v9 }
 0x184   :  { %v2711_v31 = vpop.f32.mrb[10].mxu0  ;;  %v2718_v32 = vpop.f32.mrb[10].mxu1 }
 0x185   :  { %v1216_v33 = vpop.f32.mrb[11].mxu0  ;;  %v1297_v34 = vpop.f32.mrb[11].mxu1 }
 0x186   :  { %v2927_v35 = vpack.c.bf16 %v2711_v31, %v1216_v33  ;;  %v2931_v36 = vpack.c.bf16 %v2718_v32, %v1297_v34  ;;  %2804 = vmatmul.mubr.msk.f32.vlgmr.msra.gmra.mrb[28].mxu0 %vm333_vm0, %v3206_v2  ;;  %2814 = vmatmul.mubr.msk.f32.vlgmr.msra.gmra.mrb[28].mxu1 %vm333_vm0, %v3206_v2 }
 0x187   :  { %2806 = vmatprep.mubr.msk.f32.mxu0 %vm333_vm0, %v3211_v4  ;;  %2816 = vmatprep.mubr.msk.f32.mxu1 %vm333_vm0, %v3211_v4 }
 0x188   :  { %2928 = vmatprep.subr.bf16.mxu0 %v2927_v35  ;;  %2932 = vmatprep.subr.bf16.mxu1 %v2931_v36 }
 0x189   :  { %2930 = vmatpush3.bf16.msra.mxu0 %v2927_v35  ;;  %2934 = vmatpush3.bf16.msra.mxu1 %v2931_v36 }
 0x18a   :  { %2807 = vmatmul.mubr.msk.f32.gmra.mrb[30].mxu0 %vm333_vm0, %v3220_v5  ;;  %2817 = vmatmul.mubr.msk.f32.gmra.mrb[30].mxu1 %vm333_vm0, %v3220_v5 }
 0x18b   :  { %2823 = vmatprep.mubr.msk.f32.mxu0 %vm333_vm0, %v3197_v9  ;;  %2833 = vmatprep.mubr.msk.f32.mxu1 %vm333_vm0, %v3197_v9 }
 0x18e   :  { %2824 = vmatmul.mubr.msk.f32.vlgmr.msra.gmra.mrb[32].mxu0 %vm333_vm0, %v3206_v2  ;;  %2834 = vmatmul.mubr.msk.f32.vlgmr.msra.gmra.mrb[32].mxu1 %vm333_vm0, %v3206_v2 }
 0x18f   :  { %2826 = vmatprep.mubr.msk.f32.mxu0 %vm333_vm0, %v3211_v4  ;;  %2836 = vmatprep.mubr.msk.f32.mxu1 %vm333_vm0, %v3211_v4 }
 0x192   :  { %2827 = vmatmul.mubr.msk.f32.gmra.mrb[34].mxu0 %vm333_vm0, %v3220_v5  ;;  %2837 = vmatmul.mubr.msk.f32.gmra.mrb[34].mxu1 %vm333_vm0, %v3220_v5 }
 0x235   :  { %v2725_v37 = vpop.f32.mrb[12].mxu0 }
 0x236   :  { %2344 = vst.msk [vmem:[#allocation2 + $0x8] sm:$0xff] %vm2342_vm1, %v2725_v37  ;;  %v1388_v38 = vpop.f32.mrb[13].mxu0 }
 0x237   :  { %2343 = vst.msk [vmem:[#allocation2] sm:$0xff] %vm2342_vm1, %v1388_v38 }
 0x239   :  { %v2735_v39 = vpop.f32.mrb[12].mxu1  ;;  %v2728_v40 = vpop.f32.mrb[14].mxu0 }
 0x23a   :  { %2348 = vst.msk [vmem:[#allocation2 + $0x28] sm:$0xff] %vm2342_vm1, %v2735_v39  ;;  %v1473_v41 = vpop.f32.mrb[13].mxu1  ;;  %2346 = vst.msk [vmem:[#allocation2 + $0x18] sm:$0xff] %vm2342_vm1, %v2728_v40  ;;  %v1398_v42 = vpop.f32.mrb[15].mxu0 }
 0x23b   :  { %2347 = vst.msk [vmem:[#allocation2 + $0x20] sm:$0xff] %vm2342_vm1, %v1473_v41  ;;  %2345 = vst.msk [vmem:[#allocation2 + $0x10] sm:$0xff] %vm2342_vm1, %v1398_v42 }
 0x23d   :  { %v2738_v43 = vpop.f32.mrb[14].mxu1 }
 0x23e   :  { %2350 = vst.msk [vmem:[#allocation2 + $0x38] sm:$0xff] %vm2342_vm1, %v2738_v43  ;;  %v1483_v44 = vpop.f32.mrb[15].mxu1 }
 0x23f   :  { %2349 = vst.msk [vmem:[#allocation2 + $0x30] sm:$0xff] %vm2342_vm1, %v1483_v44  ;;  %v2745_v45 = vpop.f32.mrb[16].mxu0 }
 0x240   :  { %2352 = vst.msk [vmem:[#allocation2 + $0x48] sm:$0xff] %vm2342_vm1, %v2745_v45  ;;  %v1558_v46 = vpop.f32.mrb[17].mxu0 }
 0x241   :  { %v2755_v47 = vpop.f32.mrb[16].mxu1  ;;  %2351 = vst.msk [vmem:[#allocation2 + $0x40] sm:$0xff] %vm2342_vm1, %v1558_v46 }
 0x242   :  { %2356 = vst.msk [vmem:[#allocation2 + $0x68] sm:$0xff] %vm2342_vm1, %v2755_v47  ;;  %v1643_v48 = vpop.f32.mrb[17].mxu1 }
 0x243   :  { %2355 = vst.msk [vmem:[#allocation2 + $0x60] sm:$0xff] %vm2342_vm1, %v1643_v48 }
 0x245   :  { %v2748_v49 = vpop.f32.mrb[18].mxu0  ;;  %v2758_v50 = vpop.f32.mrb[18].mxu1 }
 0x246   :  { %2354 = vst.msk [vmem:[#allocation2 + $0x58] sm:$0xff] %vm2342_vm1, %v2748_v49  ;;  %2358 = vst.msk [vmem:[#allocation2 + $0x78] sm:$0xff] %vm2342_vm1, %v2758_v50  ;;  %v1568_v51 = vpop.f32.mrb[19].mxu0  ;;  %v1653_v52 = vpop.f32.mrb[19].mxu1 }
 0x247   :  { %2353 = vst.msk [vmem:[#allocation2 + $0x50] sm:$0xff] %vm2342_vm1, %v1568_v51  ;;  %2357 = vst.msk [vmem:[#allocation2 + $0x70] sm:$0xff] %vm2342_vm1, %v1653_v52 }
 0x249   :  { %v2765_v53 = vpop.f32.mrb[20].mxu0  ;;  %v2775_v54 = vpop.f32.mrb[20].mxu1 }
 0x24a   :  { %2360 = vst.msk [vmem:[#allocation2 + $0x88] sm:$0xff] %vm2342_vm1, %v2765_v53  ;;  %2364 = vst.msk [vmem:[#allocation2 + $0xa8] sm:$0xff] %vm2342_vm1, %v2775_v54  ;;  %v1728_v55 = vpop.f32.mrb[21].mxu0  ;;  %v1813_v56 = vpop.f32.mrb[21].mxu1 }
 0x24b   :  { %2359 = vst.msk [vmem:[#allocation2 + $0x80] sm:$0xff] %vm2342_vm1, %v1728_v55  ;;  %2363 = vst.msk [vmem:[#allocation2 + $0xa0] sm:$0xff] %vm2342_vm1, %v1813_v56 }
 0x24d   :  { %v2768_v57 = vpop.f32.mrb[22].mxu0  ;;  %v2778_v58 = vpop.f32.mrb[22].mxu1 }
 0x24e   :  { %2362 = vst.msk [vmem:[#allocation2 + $0x98] sm:$0xff] %vm2342_vm1, %v2768_v57  ;;  %2366 = vst.msk [vmem:[#allocation2 + $0xb8] sm:$0xff] %vm2342_vm1, %v2778_v58  ;;  %v1738_v59 = vpop.f32.mrb[23].mxu0  ;;  %v1823_v60 = vpop.f32.mrb[23].mxu1 }
 0x24f   :  { %2361 = vst.msk [vmem:[#allocation2 + $0x90] sm:$0xff] %vm2342_vm1, %v1738_v59  ;;  %2365 = vst.msk [vmem:[#allocation2 + $0xb0] sm:$0xff] %vm2342_vm1, %v1823_v60 }
 0x251   :  { %v2785_v9 = vpop.f32.mrb[24].mxu0  ;;  %v2795_v61 = vpop.f32.mrb[24].mxu1 }
 0x252   :  { %2368 = vst.msk [vmem:[#allocation2 + $0xc8] sm:$0xff] %vm2342_vm1, %v2785_v9  ;;  %2372 = vst.msk [vmem:[#allocation2 + $0xe8] sm:$0xff] %vm2342_vm1, %v2795_v61  ;;  %v1898_v62 = vpop.f32.mrb[25].mxu0  ;;  %v1983_v63 = vpop.f32.mrb[25].mxu1 }
 0x253   :  { %2367 = vst.msk [vmem:[#allocation2 + $0xc0] sm:$0xff] %vm2342_vm1, %v1898_v62  ;;  %2371 = vst.msk [vmem:[#allocation2 + $0xe0] sm:$0xff] %vm2342_vm1, %v1983_v63 }
 0x255   :  { %v2788_v0 = vpop.f32.mrb[26].mxu0  ;;  %v2798_v1 = vpop.f32.mrb[26].mxu1 }
 0x256   :  { %2370 = vst.msk [vmem:[#allocation2 + $0xd8] sm:$0xff] %vm2342_vm1, %v2788_v0  ;;  %2374 = vst.msk [vmem:[#allocation2 + $0xf8] sm:$0xff] %vm2342_vm1, %v2798_v1  ;;  %v1908_v2 = vpop.f32.mrb[27].mxu0  ;;  %v1993_v3 = vpop.f32.mrb[27].mxu1 }
 0x257   :  { %2369 = vst.msk [vmem:[#allocation2 + $0xd0] sm:$0xff] %vm2342_vm1, %v1908_v2  ;;  %2373 = vst.msk [vmem:[#allocation2 + $0xf0] sm:$0xff] %vm2342_vm1, %v1993_v3 }
 0x259   :  { %v2805_v4 = vpop.f32.mrb[28].mxu0  ;;  %v2815_v5 = vpop.f32.mrb[28].mxu1 }
 0x25a   :  { %2376 = vst.msk [vmem:[#allocation2 + $0x108] sm:$0xff] %vm2342_vm1, %v2805_v4  ;;  %2380 = vst.msk [vmem:[#allocation2 + $0x128] sm:$0xff] %vm2342_vm1, %v2815_v5  ;;  %v2068_v6 = vpop.f32.mrb[29].mxu0  ;;  %v2153_v7 = vpop.f32.mrb[29].mxu1 }
 0x25b   :  { %2375 = vst.msk [vmem:[#allocation2 + $0x100] sm:$0xff] %vm2342_vm1, %v2068_v6  ;;  %2379 = vst.msk [vmem:[#allocation2 + $0x120] sm:$0xff] %vm2342_vm1, %v2153_v7 }
 0x25d   :  { %v2808_v8 = vpop.f32.mrb[30].mxu0  ;;  %v2818_v10 = vpop.f32.mrb[30].mxu1 }
 0x25e   :  { %2378 = vst.msk [vmem:[#allocation2 + $0x118] sm:$0xff] %vm2342_vm1, %v2808_v8  ;;  %2382 = vst.msk [vmem:[#allocation2 + $0x138] sm:$0xff] %vm2342_vm1, %v2818_v10  ;;  %v2078_v11 = vpop.f32.mrb[31].mxu0  ;;  %v2163_v12 = vpop.f32.mrb[31].mxu1 }
 0x25f   :  { %2377 = vst.msk [vmem:[#allocation2 + $0x110] sm:$0xff] %vm2342_vm1, %v2078_v11  ;;  %2381 = vst.msk [vmem:[#allocation2 + $0x130] sm:$0xff] %vm2342_vm1, %v2163_v12 }
 0x261   :  { %v2825_v13 = vpop.f32.mrb[32].mxu0  ;;  %v2835_v14 = vpop.f32.mrb[32].mxu1 }
 0x262   :  { %2384 = vst.msk [vmem:[#allocation2 + $0x148] sm:$0xff] %vm2342_vm1, %v2825_v13  ;;  %2388 = vst.msk [vmem:[#allocation2 + $0x168] sm:$0xff] %vm2342_vm1, %v2835_v14  ;;  %v2238_v15 = vpop.f32.mrb[33].mxu0  ;;  %v2323_v16 = vpop.f32.mrb[33].mxu1 }
 0x263   :  { %2383 = vst.msk [vmem:[#allocation2 + $0x140] sm:$0xff] %vm2342_vm1, %v2238_v15  ;;  %2387 = vst.msk [vmem:[#allocation2 + $0x160] sm:$0xff] %vm2342_vm1, %v2323_v16 }
 0x265   :  { %v2828_v17 = vpop.f32.mrb[34].mxu0  ;;  %v2838_v18 = vpop.f32.mrb[34].mxu1 }
 0x266   :  { %2386 = vst.msk [vmem:[#allocation2 + $0x158] sm:$0xff] %vm2342_vm1, %v2828_v17  ;;  %2390 = vst.msk [vmem:[#allocation2 + $0x178] sm:$0xff] %vm2342_vm1, %v2838_v18  ;;  %v2248_v19 = vpop.f32.mrb[35].mxu0  ;;  %v2333_v20 = vpop.f32.mrb[35].mxu1 }
 0x267   :  { %2385 = vst.msk [vmem:[#allocation2 + $0x150] sm:$0xff] %vm2342_vm1, %v2248_v19  ;;  %2389 = vst.msk [vmem:[#allocation2 + $0x170] sm:$0xff] %vm2342_vm1, %v2333_v20 }
 0x268   :  { %2952 = shalt.err (!%p2949_p4)
}
 0x269   :  { %s2953_s16 = scalar_lea.hbm %s3374_s4, 6144 }
 0x26a   :  { %p2954_p5 = scmp.ne.s32.totalorder %s3374_s4, %s2953_s16  ;;  %p2957_p6 = scmp.lt.u32.totalorder %s2953_s16, %s3374_s4 }
 0x26c   :  { %p2959_p7 = pnand %p2957_p6, %p2954_p5 }
 0x26e   :  { %2962 = shalt.err (!%p2959_p7)
}
 0x26f   :  { %s2967_s20 = smov 128   ;;  %s2968_s21 = smov 8  }
 0x270   :  { %2402 = dma.vmem_to_hbm [thread:$0]  %s2397_s12, 6144, %s3374_s4, [#allocation3], %s2967_s20, %s2967_s20, %s2968_s21  }
 0x271   :  { %2963 = dma.done.wait [#allocation3], 6144  }
 0x272   :  { %2964 = vsyncadd [#allocation3], 4294961152 }
 0x273   :  { %2406 = vsyncpa [#allocation3], 1 }

</bundles_post_ra>
